<compile_context>
chip_gen: v6e
topology: v6e:2x2x1
jax: 0.10.0
libtpu: 0.0.40
codegen_flags: <defaults>
</compile_context>

<pallas_src>
import functools

import numpy as np
import jax
import jax.numpy as jnp
from jax import lax
from jax.experimental import pallas as pl
from jax.experimental.pallas import tpu as pltpu


# ----------------------------------------------------------------------------
# Pallas kernel: fused (x @ w + b) with f32 accumulation on the MXU.
# ----------------------------------------------------------------------------
def _linear_bias_kernel(x_ref, w_ref, b_ref, o_ref):
    # x_ref: (tm, K) bf16, w_ref: (K, Np) bf16, b_ref: (1, Np) f32, o_ref: (tm, Np) f32
    acc = jnp.dot(x_ref[...], w_ref[...], preferred_element_type=jnp.float32)
    o_ref[...] = (acc + b_ref[...]).astype(o_ref.dtype)


def _round_up(n, m):
    return ((n + m - 1) // m) * m


def pallas_linear_2d(x, w, b, *, compute_dtype=jnp.bfloat16, block_rows=256):
    """y = x @ w + b with x:[M,K], w:[K,N], b:[N] -> y:[M,N] float32."""
    M, K = x.shape
    Kw, N = w.shape
    assert Kw == K and b.shape == (N,)

    # Sublane packing multiple for the MXU input dtype (bf16 packs 16 rows/vreg).
    sub = 16 if jnp.dtype(compute_dtype) == jnp.dtype(jnp.bfloat16) else 8

    # Row tile: MXU-aligned block_rows when the problem is large enough,
    # otherwise the whole (padded) row extent.  No M % tm assert -> pad instead.
    Mp = _round_up(M, sub)
    if Mp > block_rows:
        tm = block_rows
        Mp = _round_up(M, tm)
    else:
        tm = Mp

    # Lane-dense output: pad N up to a multiple of 128 so stores are unmasked.
    Np = _round_up(N, 128)

    xp = jnp.pad(x, ((0, Mp - M), (0, 0))) if Mp != M else x
    xp = xp.astype(compute_dtype)
    wp = jnp.pad(w, ((0, 0), (0, Np - N))) if Np != N else w
    wp = wp.astype(compute_dtype)
    bp = b.reshape(1, N).astype(jnp.float32)
    if Np != N:
        bp = jnp.pad(bp, ((0, 0), (0, Np - N)))

    out = pl.pallas_call(
        _linear_bias_kernel,
        out_shape=jax.ShapeDtypeStruct((Mp, Np), jnp.float32),
        grid_spec=pltpu.PrefetchScalarGridSpec(
            num_scalar_prefetch=0,
            grid=(Mp // tm,),
            in_specs=[
                pl.BlockSpec((tm, K), lambda i: (i, 0)),
                # Constant index_map -> weight / bias DMA'd once, VMEM resident
                # across the entire row grid.
                pl.BlockSpec((K, Np), lambda i: (0, 0)),
                pl.BlockSpec((1, Np), lambda i: (0, 0)),
            ],
            out_specs=pl.BlockSpec((tm, Np), lambda i: (i, 0)),
        ),
        compiler_params=pltpu.CompilerParams(
            # Row tiles are independent -> megacore sharding on v7x.
            dimension_semantics=("parallel",),
            # Allow XLA to fuse the activation producer (patch-extraction
            # transpose / pad / bf16 cast) into the pallas_call operand instead
            # of an extra HBM pass.
            allow_input_fusion=[True, False, False],
        ),
    )(xp, wp, bp)
    return out[:M, :N]


def make_pallas_linear(compute_dtype=jnp.bfloat16):
    def linear(x, w, b):
        lead, K = x.shape[:-1], x.shape[-1]
        y = pallas_linear_2d(x.reshape(-1, K), w, b, compute_dtype=compute_dtype)
        return y.reshape(*lead, w.shape[1])
    return linear


def make_reference_linear(compute_dtype=jnp.bfloat16):
    # Pure-XLA reference with the same numerics (bf16 operands, f32 accumulate).
    def linear(x, w, b):
        y = jnp.dot(x.astype(compute_dtype), w.astype(compute_dtype),
                    preferred_element_type=jnp.float32)
        return y + b.astype(jnp.float32)
    return linear


# ----------------------------------------------------------------------------
# ViT forward (matches the PyTorch module, dropout = identity).
# ----------------------------------------------------------------------------
def patch_embed(x, conv_w, conv_b, patch_size, linear):
    """Conv2d(n_channels, d_model, kernel=stride=P) == patch extract + matmul."""
    B, C, H, W = x.shape
    P = patch_size
    d_model = conv_w.shape[0]
    nh, nw = H // P, W // P
    # [B,C,nh,P,nw,P] -> [B,nh,nw,C,P,P] -> [B, nh*nw, C*P*P]  ((c,ph,pw) order)
    patches = x.reshape(B, C, nh, P, nw, P).transpose(0, 2, 4, 1, 3, 5)
    patches = patches.reshape(B, nh * nw, C * P * P)
    # TODO(synk): fully fuse patch extraction into the kernel via a (1,C,P,W)
    # strip BlockSpec; currently allow_input_fusion lets XLA fuse this
    # transpose into the pallas_call operand.
    w_mat = conv_w.reshape(d_model, C * P * P).T
    return linear(patches, w_mat, conv_b)


def layer_norm(x, gamma, beta, eps=1e-5):
    mu = jnp.mean(x, axis=-1, keepdims=True)
    var = jnp.mean(jnp.square(x - mu), axis=-1, keepdims=True)
    return (x - mu) * lax.rsqrt(var + eps) * gamma + beta


def attention_head(x, w_qkv, b_qkv, linear):
    B, N, C = x.shape
    qkv = linear(x, w_qkv, b_qkv).reshape(B, N, 3, C)
    q, k, v = qkv[:, :, 0, :], qkv[:, :, 1, :], qkv[:, :, 2, :]
    scores = jnp.einsum("bnd,bmd->bnm", q, k) / (C ** 0.5)
    attn = jax.nn.softmax(scores, axis=-1)
    return jnp.einsum("bnm,bmd->bnd", attn, v)


def encoder_layer(x, p, linear):
    h = layer_norm(x, p["ln1_g"], p["ln1_b"])
    heads = [attention_head(h, w, b, linear) for (w, b) in p["heads"]]
    attn = jnp.concatenate(heads, axis=-1)
    x = x + linear(attn, p["proj_w"], p["proj_b"])                 # dropout: id
    h = layer_norm(x, p["ln2_g"], p["ln2_b"])
    ff = jax.nn.gelu(linear(h, p["ff1_w"], p["ff1_b"]), approximate=False)
    ff = linear(ff, p["ff2_w"], p["ff2_b"])
    return x + ff                                                  # dropout: id


def vit_forward(params, x, linear, patch_size):
    pe = patch_embed(x, params["patch_w"], params["patch_b"], patch_size, linear)
    B, _, d_model = pe.shape
    cls = jnp.broadcast_to(params["cls_token"], (B, 1, d_model))
    h = jnp.concatenate([cls, pe], axis=1) + params["pos_mat"]
    for layer_p in params["layers"]:
        h = encoder_layer(h, layer_p, linear)
    return linear(h[:, 0], params["cls_w"], params["cls_b"])


# ----------------------------------------------------------------------------
# Deterministic parameter init (PyTorch-like uniform(-1/sqrt(fan_in), ...)).
# ----------------------------------------------------------------------------
def _init_linear(key, fan_in, fan_out):
    kw, kb = jax.random.split(key)
    s = 1.0 / np.sqrt(fan_in)
    w = jax.random.uniform(kw, (fan_in, fan_out), jnp.float32, -s, s)
    b = jax.random.uniform(kb, (fan_out,), jnp.float32, -s, s)
    return w, b


def _positional_matrix(max_sequence, d_model):
    pos = np.arange(max_sequence + 1, dtype=np.float64)[:, None]
    i = np.arange(d_model, dtype=np.float64)[None, :]
    angle = pos / np.power(10000.0, (i - (i % 2)) / d_model)
    mat = np.where(i % 2 == 0, np.sin(angle), np.cos(angle))
    return jnp.asarray(mat[None, :, :], dtype=jnp.float32)


def init_params(key, *, patch_size, n_channels, d_model, d_ratio, num_heads,
                n_layers, classes, max_sequence):
    k_conv, k_cls, k_layers, k_head = jax.random.split(key, 4)

    kw, kb = jax.random.split(k_conv)
    fan_in = n_channels * patch_size * patch_size
    s = 1.0 / np.sqrt(fan_in)
    patch_w = jax.random.uniform(
        kw, (d_model, n_channels, patch_size, patch_size), jnp.float32, -s, s)
    patch_b = jax.random.uniform(kb, (d_model,), jnp.float32, -s, s)

    layers = []
    for lk in jax.random.split(k_layers, n_layers):
        keys = jax.random.split(lk, num_heads + 3)
        heads = [_init_linear(keys[h], d_model, 3 * d_model) for h in range(num_heads)]
        proj_w, proj_b = _init_linear(keys[num_heads], d_model * num_heads, d_model)
        ff1_w, ff1_b = _init_linear(keys[num_heads + 1], d_model, d_model * d_ratio)
        ff2_w, ff2_b = _init_linear(keys[num_heads + 2], d_model * d_ratio, d_model)
        layers.append(dict(
            ln1_g=jnp.ones((d_model,), jnp.float32),
            ln1_b=jnp.zeros((d_model,), jnp.float32),
            heads=heads, proj_w=proj_w, proj_b=proj_b,
            ln2_g=jnp.ones((d_model,), jnp.float32),
            ln2_b=jnp.zeros((d_model,), jnp.float32),
            ff1_w=ff1_w, ff1_b=ff1_b, ff2_w=ff2_w, ff2_b=ff2_b))

    cls_w, cls_b = _init_linear(k_head, d_model, classes)
    cls_token = jax.random.normal(k_cls, (1, 1, d_model), jnp.float32)

    return dict(patch_w=patch_w, patch_b=patch_b, cls_token=cls_token,
                pos_mat=_positional_matrix(max_sequence, d_model),
                layers=layers, cls_w=cls_w, cls_b=cls_b)


if __name__ == "__main__":
    # Small ViT consistent with the module: 16x16 images, 4 channels, 4x4
    # patches -> 16 patches (= max_sequence), d_model=32, 2 heads, 2 layers.
    B, C, H, W = 2, 4, 16, 16
    patch_size = 4
    d_model, d_ratio, num_heads, n_layers, classes = 32, 4, 2, 2, 10
    num_patches = (H // patch_size) * (W // patch_size)

    key = jax.random.PRNGKey(0)
    k_x, k_p = jax.random.split(key)
    x = jax.random.normal(k_x, (B, C, H, W), jnp.float32)
    params = init_params(
        k_p, patch_size=patch_size, n_channels=C, d_model=d_model,
        d_ratio=d_ratio, num_heads=num_heads, n_layers=n_layers,
        classes=classes, max_sequence=num_patches)

    pallas_lin = make_pallas_linear(jnp.bfloat16)
    ref_lin = make_reference_linear(jnp.bfloat16)

    fwd = jax.jit(functools.partial(vit_forward, linear=pallas_lin,
                                    patch_size=patch_size))
    logits = jax.block_until_ready(fwd(params, x))
    assert logits.shape == (B, classes)

    # Check 1: patch-embed kernel vs. lax conv (same bf16-rounded operands).
    pe = patch_embed(x, params["patch_w"], params["patch_b"], patch_size, pallas_lin)
    xb = x.astype(jnp.bfloat16).astype(jnp.float32)
    wb = params["patch_w"].astype(jnp.bfloat16).astype(jnp.float32)
    ref_conv = lax.conv_general_dilated(
        xb, wb, window_strides=(patch_size, patch_size), padding="VALID",
        dimension_numbers=("NCHW", "OIHW", "NCHW"))
    ref_conv = ref_conv + params["patch_b"].reshape(1, d_model, 1, 1)
    ref_conv = ref_conv.reshape(B, d_model, num_patches).transpose(0, 2, 1)
    assert jnp.allclose(pe, ref_conv, atol=2e-2, rtol=2e-2), (
        float(jnp.max(jnp.abs(pe - ref_conv))))

    # Check 2: full forward vs. pure-XLA reference with matching numerics.
    ref_logits = vit_forward(params, x, ref_lin, patch_size)
    assert jnp.allclose(logits, ref_logits, atol=2e-2, rtol=2e-2), (
        float(jnp.max(jnp.abs(logits - ref_logits))))

    print("KERNEL_OK")
</pallas_src>

<mosaic_0001>
module attributes {stable_mosaic.version = 11 : i64} {
  func.func @_linear_bias_kernel(%arg0: i32, %arg1: memref<32x64xbf16, #tpu.memory_space<vmem>>, %arg2: memref<64x128xbf16, #tpu.memory_space<vmem>>, %arg3: memref<1x128xf32, #tpu.memory_space<vmem>>, %arg4: memref<32x128xf32, #tpu.memory_space<vmem>>) attributes {dimension_semantics = [#tpu.dimension_semantics<parallel>], iteration_bounds = array<i64: 1>, scalar_prefetch = 0 : i64, scratch_operands = 0 : i64, tpu.core_type = #tpu.core_type<tc>, window_params = [{transform_indices = @transform_0, window_bounds = array<i64: 32, 64>}, {pipeline_mode = #tpu.pipeline_mode<synchronous>, transform_indices = @transform_1, window_bounds = array<i64: 64, 128>}, {pipeline_mode = #tpu.pipeline_mode<synchronous>, transform_indices = @transform_2, window_bounds = array<i64: 1, 128>}, {transform_indices = @transform_3, window_bounds = array<i64: 32, 128>}]} {
    %c0 = arith.constant 0 : index
    %c0_0 = arith.constant 0 : index
    %0 = vector.load %arg1[%c0, %c0_0] : memref<32x64xbf16, #tpu.memory_space<vmem>>, vector<32x64xbf16>
    %c0_1 = arith.constant 0 : index
    %c0_2 = arith.constant 0 : index
    %1 = vector.load %arg2[%c0_1, %c0_2] : memref<64x128xbf16, #tpu.memory_space<vmem>>, vector<64x128xbf16>
    %cst = arith.constant dense<0.000000e+00> : vector<32x128xf32>
    %2 = tpu.matmul %0, %1, %cst {dimension_numbers = #tpu.dot_dimension_numbers<[1], [0], [0], [1], [0, 0, 1, 1], [], []>} : vector<32x64xbf16>, vector<64x128xbf16>, vector<32x128xf32> -> vector<32x128xf32>
    %c0_3 = arith.constant 0 : index
    %c0_4 = arith.constant 0 : index
    %3 = vector.load %arg3[%c0_3, %c0_4] : memref<1x128xf32, #tpu.memory_space<vmem>>, vector<1x128xf32>
    %4 = vector.broadcast %3 : vector<1x128xf32> to vector<32x128xf32>
    %5 = arith.addf %2, %4 : vector<32x128xf32>
    %c0_5 = arith.constant 0 : index
    %c0_6 = arith.constant 0 : index
    %6 = vector.load %arg4[%c0_5, %c0_6] : memref<32x128xf32, #tpu.memory_space<vmem>>, vector<32x128xf32>
    tpu.vector_store %arg4[%c0_5, %c0_6], %5 {strides = array<i32>} : memref<32x128xf32, #tpu.memory_space<vmem>>, vector<32x128xf32>,
    return
  }
  func.func @transform_0(%arg0: i32) -> (i32, i32) {
    %c0_i32 = arith.constant 0 : i32
    %c0_i32_0 = arith.constant 0 : i32
    return %arg0, %c0_i32 : i32, i32
  }
  func.func @transform_1(%arg0: i32) -> (i32, i32) {
    %c0_i32 = arith.constant 0 : i32
    %c0_i32_0 = arith.constant 0 : i32
    %c0_i32_1 = arith.constant 0 : i32
    return %c0_i32, %c0_i32_0 : i32, i32
  }
  func.func @transform_2(%arg0: i32) -> (i32, i32) {
    %c0_i32 = arith.constant 0 : i32
    %c0_i32_0 = arith.constant 0 : i32
    %c0_i32_1 = arith.constant 0 : i32
    return %c0_i32, %c0_i32_0 : i32, i32
  }
  func.func @transform_3(%arg0: i32) -> (i32, i32) {
    %c0_i32 = arith.constant 0 : i32
    %c0_i32_0 = arith.constant 0 : i32
    return %arg0, %c0_i32 : i32, i32
  }
}

module attributes {stable_mosaic.version = 11 : i64} {
  func.func @_linear_bias_kernel(%arg0: i32, %arg1: memref<48x32xbf16, #tpu.memory_space<vmem>>, %arg2: memref<32x128xbf16, #tpu.memory_space<vmem>>, %arg3: memref<1x128xf32, #tpu.memory_space<vmem>>, %arg4: memref<48x128xf32, #tpu.memory_space<vmem>>) attributes {dimension_semantics = [#tpu.dimension_semantics<parallel>], iteration_bounds = array<i64: 1>, scalar_prefetch = 0 : i64, scratch_operands = 0 : i64, tpu.core_type = #tpu.core_type<tc>, window_params = [{transform_indices = @transform_0, window_bounds = array<i64: 48, 32>}, {pipeline_mode = #tpu.pipeline_mode<synchronous>, transform_indices = @transform_1, window_bounds = array<i64: 32, 128>}, {pipeline_mode = #tpu.pipeline_mode<synchronous>, transform_indices = @transform_2, window_bounds = array<i64: 1, 128>}, {transform_indices = @transform_3, window_bounds = array<i64: 48, 128>}]} {
    %c0 = arith.constant 0 : index
    %c0_0 = arith.constant 0 : index
    %0 = vector.load %arg1[%c0, %c0_0] : memref<48x32xbf16, #tpu.memory_space<vmem>>, vector<48x32xbf16>
    %c0_1 = arith.constant 0 : index
    %c0_2 = arith.constant 0 : index
    %1 = vector.load %arg2[%c0_1, %c0_2] : memref<32x128xbf16, #tpu.memory_space<vmem>>, vector<32x128xbf16>
    %cst = arith.constant dense<0.000000e+00> : vector<48x128xf32>
    %2 = tpu.matmul %0, %1, %cst {dimension_numbers = #tpu.dot_dimension_numbers<[1], [0], [0], [1], [0, 0, 1, 1], [], []>} : vector<48x32xbf16>, vector<32x128xbf16>, vector<48x128xf32> -> vector<48x128xf32>
    %c0_3 = arith.constant 0 : index
    %c0_4 = arith.constant 0 : index
    %3 = vector.load %arg3[%c0_3, %c0_4] : memref<1x128xf32, #tpu.memory_space<vmem>>, vector<1x128xf32>
    %4 = vector.broadcast %3 : vector<1x128xf32> to vector<48x128xf32>
    %5 = arith.addf %2, %4 : vector<48x128xf32>
    %c0_5 = arith.constant 0 : index
    %c0_6 = arith.constant 0 : index
    %6 = vector.load %arg4[%c0_5, %c0_6] : memref<48x128xf32, #tpu.memory_space<vmem>>, vector<48x128xf32>
    tpu.vector_store %arg4[%c0_5, %c0_6], %5 {strides = array<i32>} : memref<48x128xf32, #tpu.memory_space<vmem>>, vector<48x128xf32>,
    return
  }
  func.func @transform_0(%arg0: i32) -> (i32, i32) {
    %c0_i32 = arith.constant 0 : i32
    %c0_i32_0 = arith.constant 0 : i32
    return %arg0, %c0_i32 : i32, i32
  }
  func.func @transform_1(%arg0: i32) -> (i32, i32) {
    %c0_i32 = arith.constant 0 : i32
    %c0_i32_0 = arith.constant 0 : i32
    %c0_i32_1 = arith.constant 0 : i32
    return %c0_i32, %c0_i32_0 : i32, i32
  }
  func.func @transform_2(%arg0: i32) -> (i32, i32) {
    %c0_i32 = arith.constant 0 : i32
    %c0_i32_0 = arith.constant 0 : i32
    %c0_i32_1 = arith.constant 0 : i32
    return %c0_i32, %c0_i32_0 : i32, i32
  }
  func.func @transform_3(%arg0: i32) -> (i32, i32) {
    %c0_i32 = arith.constant 0 : i32
    %c0_i32_0 = arith.constant 0 : i32
    return %arg0, %c0_i32 : i32, i32
  }
}

module attributes {stable_mosaic.version = 11 : i64} {
  func.func @_linear_bias_kernel(%arg0: i32, %arg1: memref<48x64xbf16, #tpu.memory_space<vmem>>, %arg2: memref<64x128xbf16, #tpu.memory_space<vmem>>, %arg3: memref<1x128xf32, #tpu.memory_space<vmem>>, %arg4: memref<48x128xf32, #tpu.memory_space<vmem>>) attributes {dimension_semantics = [#tpu.dimension_semantics<parallel>], iteration_bounds = array<i64: 1>, scalar_prefetch = 0 : i64, scratch_operands = 0 : i64, tpu.core_type = #tpu.core_type<tc>, window_params = [{transform_indices = @transform_0, window_bounds = array<i64: 48, 64>}, {pipeline_mode = #tpu.pipeline_mode<synchronous>, transform_indices = @transform_1, window_bounds = array<i64: 64, 128>}, {pipeline_mode = #tpu.pipeline_mode<synchronous>, transform_indices = @transform_2, window_bounds = array<i64: 1, 128>}, {transform_indices = @transform_3, window_bounds = array<i64: 48, 128>}]} {
    %c0 = arith.constant 0 : index
    %c0_0 = arith.constant 0 : index
    %0 = vector.load %arg1[%c0, %c0_0] : memref<48x64xbf16, #tpu.memory_space<vmem>>, vector<48x64xbf16>
    %c0_1 = arith.constant 0 : index
    %c0_2 = arith.constant 0 : index
    %1 = vector.load %arg2[%c0_1, %c0_2] : memref<64x128xbf16, #tpu.memory_space<vmem>>, vector<64x128xbf16>
    %cst = arith.constant dense<0.000000e+00> : vector<48x128xf32>
    %2 = tpu.matmul %0, %1, %cst {dimension_numbers = #tpu.dot_dimension_numbers<[1], [0], [0], [1], [0, 0, 1, 1], [], []>} : vector<48x64xbf16>, vector<64x128xbf16>, vector<48x128xf32> -> vector<48x128xf32>
    %c0_3 = arith.constant 0 : index
    %c0_4 = arith.constant 0 : index
    %3 = vector.load %arg3[%c0_3, %c0_4] : memref<1x128xf32, #tpu.memory_space<vmem>>, vector<1x128xf32>
    %4 = vector.broadcast %3 : vector<1x128xf32> to vector<48x128xf32>
    %5 = arith.addf %2, %4 : vector<48x128xf32>
    %c0_5 = arith.constant 0 : index
    %c0_6 = arith.constant 0 : index
    %6 = vector.load %arg4[%c0_5, %c0_6] : memref<48x128xf32, #tpu.memory_space<vmem>>, vector<48x128xf32>
    tpu.vector_store %arg4[%c0_5, %c0_6], %5 {strides = array<i32>} : memref<48x128xf32, #tpu.memory_space<vmem>>, vector<48x128xf32>,
    return
  }
  func.func @transform_0(%arg0: i32) -> (i32, i32) {
    %c0_i32 = arith.constant 0 : i32
    %c0_i32_0 = arith.constant 0 : i32
    return %arg0, %c0_i32 : i32, i32
  }
  func.func @transform_1(%arg0: i32) -> (i32, i32) {
    %c0_i32 = arith.constant 0 : i32
    %c0_i32_0 = arith.constant 0 : i32
    %c0_i32_1 = arith.constant 0 : i32
    return %c0_i32, %c0_i32_0 : i32, i32
  }
  func.func @transform_2(%arg0: i32) -> (i32, i32) {
    %c0_i32 = arith.constant 0 : i32
    %c0_i32_0 = arith.constant 0 : i32
    %c0_i32_1 = arith.constant 0 : i32
    return %c0_i32, %c0_i32_0 : i32, i32
  }
  func.func @transform_3(%arg0: i32) -> (i32, i32) {
    %c0_i32 = arith.constant 0 : i32
    %c0_i32_0 = arith.constant 0 : i32
    return %arg0, %c0_i32 : i32, i32
  }
}

module attributes {stable_mosaic.version = 11 : i64} {
  func.func @_linear_bias_kernel(%arg0: i32, %arg1: memref<48x128xbf16, #tpu.memory_space<vmem>>, %arg2: memref<128x128xbf16, #tpu.memory_space<vmem>>, %arg3: memref<1x128xf32, #tpu.memory_space<vmem>>, %arg4: memref<48x128xf32, #tpu.memory_space<vmem>>) attributes {dimension_semantics = [#tpu.dimension_semantics<parallel>], iteration_bounds = array<i64: 1>, scalar_prefetch = 0 : i64, scratch_operands = 0 : i64, tpu.core_type = #tpu.core_type<tc>, window_params = [{transform_indices = @transform_0, window_bounds = array<i64: 48, 128>}, {pipeline_mode = #tpu.pipeline_mode<synchronous>, transform_indices = @transform_1, window_bounds = array<i64: 128, 128>}, {pipeline_mode = #tpu.pipeline_mode<synchronous>, transform_indices = @transform_2, window_bounds = array<i64: 1, 128>}, {transform_indices = @transform_3, window_bounds = array<i64: 48, 128>}]} {
    %c0 = arith.constant 0 : index
    %c0_0 = arith.constant 0 : index
    %0 = vector.load %arg1[%c0, %c0_0] : memref<48x128xbf16, #tpu.memory_space<vmem>>, vector<48x128xbf16>
    %c0_1 = arith.constant 0 : index
    %c0_2 = arith.constant 0 : index
    %1 = vector.load %arg2[%c0_1, %c0_2] : memref<128x128xbf16, #tpu.memory_space<vmem>>, vector<128x128xbf16>
    %cst = arith.constant dense<0.000000e+00> : vector<48x128xf32>
    %2 = tpu.matmul %0, %1, %cst {dimension_numbers = #tpu.dot_dimension_numbers<[1], [0], [0], [1], [0, 0, 1, 1], [], []>} : vector<48x128xbf16>, vector<128x128xbf16>, vector<48x128xf32> -> vector<48x128xf32>
    %c0_3 = arith.constant 0 : index
    %c0_4 = arith.constant 0 : index
    %3 = vector.load %arg3[%c0_3, %c0_4] : memref<1x128xf32, #tpu.memory_space<vmem>>, vector<1x128xf32>
    %4 = vector.broadcast %3 : vector<1x128xf32> to vector<48x128xf32>
    %5 = arith.addf %2, %4 : vector<48x128xf32>
    %c0_5 = arith.constant 0 : index
    %c0_6 = arith.constant 0 : index
    %6 = vector.load %arg4[%c0_5, %c0_6] : memref<48x128xf32, #tpu.memory_space<vmem>>, vector<48x128xf32>
    tpu.vector_store %arg4[%c0_5, %c0_6], %5 {strides = array<i32>} : memref<48x128xf32, #tpu.memory_space<vmem>>, vector<48x128xf32>,
    return
  }
  func.func @transform_0(%arg0: i32) -> (i32, i32) {
    %c0_i32 = arith.constant 0 : i32
    %c0_i32_0 = arith.constant 0 : i32
    return %arg0, %c0_i32 : i32, i32
  }
  func.func @transform_1(%arg0: i32) -> (i32, i32) {
    %c0_i32 = arith.constant 0 : i32
    %c0_i32_0 = arith.constant 0 : i32
    %c0_i32_1 = arith.constant 0 : i32
    return %c0_i32, %c0_i32_0 : i32, i32
  }
  func.func @transform_2(%arg0: i32) -> (i32, i32) {
    %c0_i32 = arith.constant 0 : i32
    %c0_i32_0 = arith.constant 0 : i32
    %c0_i32_1 = arith.constant 0 : i32
    return %c0_i32, %c0_i32_0 : i32, i32
  }
  func.func @transform_3(%arg0: i32) -> (i32, i32) {
    %c0_i32 = arith.constant 0 : i32
    %c0_i32_0 = arith.constant 0 : i32
    return %arg0, %c0_i32 : i32, i32
  }
}

module attributes {stable_mosaic.version = 11 : i64} {
  func.func @_linear_bias_kernel(%arg0: i32, %arg1: memref<16x32xbf16, #tpu.memory_space<vmem>>, %arg2: memref<32x128xbf16, #tpu.memory_space<vmem>>, %arg3: memref<1x128xf32, #tpu.memory_space<vmem>>, %arg4: memref<16x128xf32, #tpu.memory_space<vmem>>) attributes {dimension_semantics = [#tpu.dimension_semantics<parallel>], iteration_bounds = array<i64: 1>, scalar_prefetch = 0 : i64, scratch_operands = 0 : i64, tpu.core_type = #tpu.core_type<tc>, window_params = [{transform_indices = @transform_0, window_bounds = array<i64: 16, 32>}, {pipeline_mode = #tpu.pipeline_mode<synchronous>, transform_indices = @transform_1, window_bounds = array<i64: 32, 128>}, {pipeline_mode = #tpu.pipeline_mode<synchronous>, transform_indices = @transform_2, window_bounds = array<i64: 1, 128>}, {transform_indices = @transform_3, window_bounds = array<i64: 16, 128>}]} {
    %c0 = arith.constant 0 : index
    %c0_0 = arith.constant 0 : index
    %0 = vector.load %arg1[%c0, %c0_0] : memref<16x32xbf16, #tpu.memory_space<vmem>>, vector<16x32xbf16>
    %c0_1 = arith.constant 0 : index
    %c0_2 = arith.constant 0 : index
    %1 = vector.load %arg2[%c0_1, %c0_2] : memref<32x128xbf16, #tpu.memory_space<vmem>>, vector<32x128xbf16>
    %cst = arith.constant dense<0.000000e+00> : vector<16x128xf32>
    %2 = tpu.matmul %0, %1, %cst {dimension_numbers = #tpu.dot_dimension_numbers<[1], [0], [0], [1], [0, 0, 1, 1], [], []>} : vector<16x32xbf16>, vector<32x128xbf16>, vector<16x128xf32> -> vector<16x128xf32>
    %c0_3 = arith.constant 0 : index
    %c0_4 = arith.constant 0 : index
    %3 = vector.load %arg3[%c0_3, %c0_4] : memref<1x128xf32, #tpu.memory_space<vmem>>, vector<1x128xf32>
    %4 = vector.broadcast %3 : vector<1x128xf32> to vector<16x128xf32>
    %5 = arith.addf %2, %4 : vector<16x128xf32>
    %c0_5 = arith.constant 0 : index
    %c0_6 = arith.constant 0 : index
    %6 = vector.load %arg4[%c0_5, %c0_6] : memref<16x128xf32, #tpu.memory_space<vmem>>, vector<16x128xf32>
    tpu.vector_store %arg4[%c0_5, %c0_6], %5 {strides = array<i32>} : memref<16x128xf32, #tpu.memory_space<vmem>>, vector<16x128xf32>,
    return
  }
  func.func @transform_0(%arg0: i32) -> (i32, i32) {
    %c0_i32 = arith.constant 0 : i32
    %c0_i32_0 = arith.constant 0 : i32
    return %arg0, %c0_i32 : i32, i32
  }
  func.func @transform_1(%arg0: i32) -> (i32, i32) {
    %c0_i32 = arith.constant 0 : i32
    %c0_i32_0 = arith.constant 0 : i32
    %c0_i32_1 = arith.constant 0 : i32
    return %c0_i32, %c0_i32_0 : i32, i32
  }
  func.func @transform_2(%arg0: i32) -> (i32, i32) {
    %c0_i32 = arith.constant 0 : i32
    %c0_i32_0 = arith.constant 0 : i32
    %c0_i32_1 = arith.constant 0 : i32
    return %c0_i32, %c0_i32_0 : i32, i32
  }
  func.func @transform_3(%arg0: i32) -> (i32, i32) {
    %c0_i32 = arith.constant 0 : i32
    %c0_i32_0 = arith.constant 0 : i32
    return %arg0, %c0_i32 : i32, i32
  }
}

</mosaic_0001>

<bundles_post_ra>
// kernel: vit_forward.23
= control target key start
LH: loop header
LB: loop body
LE: loop exit
PB: predicated region body
PF: predicated region fallthrough
CT: control target
= control target key end

     0   :  { %vm68_vm0 = vcmask 523264   ;;  %s218_s1 = inlined_call_operand.vmem [shape: bf16[64,128], index: 1, kind: input, shape index: {}]   ;;  %s219_s0 = inlined_call_operand.vmem [shape: bf16[32,64], index: 0, kind: input, shape index: {}]   ;;  %s220_s2 = inlined_call_operand.vmem [shape: f32[1,128], index: 2, kind: input, shape index: {}]   ;;  %s221_s3 = inlined_call_operand.vmem [shape: f32[32,128], index: 3, kind: output, shape index: {}]  }
   0x1   :  { %v159_v0 = vld [vmem:[%s218_s1 + $0x18] sm:$0xff]   ;;  %v160_v1 = vld [vmem:[%s218_s1 + $0x10] sm:$0xff]   ;;  %v161_v2 = vld [vmem:[%s218_s1 + $0x8] sm:$0xff]  }
   0x2   :  { %147 = vmatprep.subr.bf16.mxu0 %v159_v0  ;;  %v163_v3 = vld [vmem:[%s219_s0] sm:$0xff]   ;;  %v164_v5 = vld [vmem:[%s219_s0 + $0x8] sm:$0xff]  }
   0x3   :  { %148 = vmatpush3.bf16.msra.mxu0 %v159_v0  ;;  %155 = vmatprep.mubr.msk.bf16.mxu0 %vm68_vm0, %v163_v3  ;;  %v162_v4 = vld [vmem:[%s218_s1] sm:$0xff]  }
   0x4   :  { %149 = vmatprep.subr.bf16.mxu0 %v160_v1  ;;  %v132_v6 = vld [vmem:[%s220_s2] ss:$0 sm:$0xff] }
   0x7   :  { %150 = vmatpush3.bf16.msra.mxu0 %v160_v1 }
   0x8   :  { %151 = vmatprep.subr.bf16.mxu0 %v161_v2 }
   0xb   :  { %152 = vmatpush3.bf16.msra.mxu0 %v161_v2 }
   0xc   :  { %153 = vmatprep.subr.bf16.mxu0 %v162_v4 }
   0xf   :  { %154 = vmatpush3.bf16.msra.mxu0 %v162_v4 }
  0x12   :  { %156 = vmatmul.mubr.msk.bf16.vlgmr.msra.gmra.mxu0 %vm68_vm0, %v164_v5 }
  0xd2   :  { %v157_v7 = vpop.f32.mrf.mxu0 }
  0xd3   :  { %v118_v8 = vadd.f32 %v157_v7, %v132_v6 }
  0xd4   :  { %v109_v9 = vpop.f32.mrf.mxu0 }
  0xd5   :  { %126 = vst [vmem:[%s221_s3 + $0x10] sm:$0xff] %v118_v8  ;;  %v110_v10 = vadd.f32 %v132_v6, %v109_v9 }
  0xd6   :  { %v158_v11 = vpop.f32.mrf.mxu0 }
  0xd7   :  { %124 = vst [vmem:[%s221_s3] sm:$0xff] %v110_v10  ;;  %v121_v12 = vadd.f32 %v158_v11, %v132_v6 }
  0xd8   :  { %v112_v13 = vpop.f32.mrf.mxu0 }
  0xd9   :  { %127 = vst [vmem:[%s221_s3 + $0x18] sm:$0xff] %v121_v12  ;;  %v113_v14 = vadd.f32 %v132_v6, %v112_v13 }
  0xdb   :  { %125 = vst [vmem:[%s221_s3 + $0x8] sm:$0xff] %v113_v14 }

// kernel: vit_forward.25
= control target key start
LH: loop header
LB: loop body
LE: loop exit
PB: predicated region body
PF: predicated region fallthrough
CT: control target
= control target key end

     0   :  { %s382_s0 = inlined_call_operand.vmem [shape: bf16[32,128], index: 0, kind: input, shape index: {}]   ;;  %s383_s1 = inlined_call_operand.vmem [shape: f32[1,128], index: 1, kind: input, shape index: {}]   ;;  %s384_s2 = inlined_call_operand.vmem [shape: bf16[34,32], index: 2, kind: input, shape index: {}]   ;;  %s385_s3 = inlined_call_operand.<no memory space> [shape: bf16[], index: 3, kind: input, shape index: {}]   ;;  %s386_s4 = inlined_call_operand.vmem [shape: f32[48,128], index: 4, kind: output, shape index: {}]  }
   0x1   :  { %v9_v0 = vstv %s385_s3 }
   0x2   :  { %v10_v1 = vunpack.i.l.bf16 %v9_v0 }
   0x3   :  { %v303_v2 = vld [vmem:[%s382_s0 + $0x8] sm:$0xff]   ;;  %v28_v3 = vlaneseq  ;;  %v308_v4 = vmov 0.0   ;;  %v304_v5 = vld [vmem:[%s382_s0] sm:$0xff]   ;;  %v261_v9 = vld [vmem:[%s384_s2 + $0x10] sm:$0xf]  ;;  %vm309_vm0 = vmmov 0  }
   0x4   :  { %297 = vmatprep.subr.bf16.mxu1 %v308_v4  ;;  %281 = vmatprep.subr.bf16.mxu0 %v308_v4  ;;  %v259_v7 = vld [vmem:[%s384_s2 + $0x8] sm:$0xff]   ;;  %v20_v8 = vld [vmem:[%s384_s2] sm:$0xff]   ;;  %v114_v14 = vunpack.c.l.bf16 %v261_v9  ;;  %vm181_vm3 = vcmask 261120  }
   0x5   :  { %299 = vmatpush3.bf16.msra.mxu1 %v303_v2  ;;  %282 = vmatpush3.bf16.msra.mxu0 %v303_v2  ;;  %v29_v6 = vand.u32 127, %v28_v3  ;;  %v58_v10 = vunpack.c.l.bf16 %v259_v7  ;;  %v86_v11 = vunpack.c.h.bf16 %v259_v7  ;;  %v21_v12 = vunpack.c.l.bf16 %v20_v8  ;;  %v262_v31 = vld [vmem:[%s383_s1] ss:$0 sm:$0xff] }
   0x6   :  { %298 = vmatprep.subr.bf16.mxu1 %v308_v4  ;;  %283 = vmatprep.subr.bf16.mxu0 %v308_v4  ;;  %v39_v13 = vunpack.c.h.bf16 %v20_v8  ;;  %v117_v15 = vshrl.u32 %v28_v3, 7 }
   0x7   :  { %289 = vmatprep.mubr.msk.bf16.mxu1 %vm309_vm0, %v308_v4  ;;  %vm31_vm1 = vcmp.lt.s32.totalorder %v29_v6, 32  ;;  %285 = vmatprep.mubr.msk.bf16.mxu0 %vm309_vm0, %v308_v4 }
   0x8   :  { %v69_v16 = vsel %vm31_vm1, %v58_v10, %v10_v1  ;;  %v97_v17 = vsel %vm31_vm1, %v86_v11, %v10_v1  ;;  %v32_v18 = vsel %vm31_vm1, %v21_v12, %v10_v1  ;;  %v50_v19 = vsel %vm31_vm1, %v39_v13, %v10_v1 }
   0x9   :  { %300 = vmatpush3.bf16.msra.mxu1 %v304_v5  ;;  %284 = vmatpush3.bf16.msra.mxu0 %v304_v5  ;;  %v71_v20 = vpack.c.bf16 %v308_v4, %v69_v16  ;;  %v99_v21 = vpack.c.bf16 %v308_v4, %v97_v17  ;;  %v33_v22 = vpack.c.bf16 %v308_v4, %v32_v18  ;;  %v118_v23 = vadd.s32 32, %v117_v15 }
   0xa   :  { %v52_v24 = vpack.c.bf16 %v308_v4, %v50_v19 }
   0xb   :  { %74 = vst [vmem:[#allocation7 + $0x8] sm:$0xf] %v71_v20  ;;  %102 = vst [vmem:[#allocation7 + $0xc] sm:$0xf] %v99_v21  ;;  %vm119_vm2 = vcmp.lt.s32.totalorder %v118_v23, 34 }
   0xc   :  { %36 = vst [vmem:[#allocation7] sm:$0xf] %v33_v22  ;;  %55 = vst [vmem:[#allocation7 + $0x4] sm:$0xf] %v52_v24  ;;  %v120_v25 = vsel %vm119_vm2, %v114_v14, %v10_v1 }
   0xd   :  { %v125_v26 = vsel %vm31_vm1, %v120_v25, %v10_v1 }
   0xe   :  { %v274_v27 = vpack.c.bf16 %v10_v1, %v125_v26 }
  0x10   :  { %275 = vst [vmem:[#allocation7 + $0x10] sm:$0xff] %v274_v27  }
  0x12   :  { %v305_v28 = vld [vmem:[#allocation7 + $0x8] sm:$0xff]  }
  0x13   :  { %v306_v29 = vld [vmem:[#allocation7] sm:$0xff]   ;;  %290 = vmatmul.mubr.msk.bf16.vlgmr.msra.gmra.mxu1 %vm181_vm3, %v305_v28 }
  0x14   :  { %286 = vmatmul.mubr.msk.bf16.vlgmr.msra.gmra.mxu0 %vm181_vm3, %v306_v29  ;;  %293 = vmatprep.mubr.msk.bf16.mxu1 %vm309_vm0, %v308_v4 }
  0x17   :  { %v307_v30 = vld [vmem:[#allocation7 + $0x10] sm:$0xff]  }
  0x1b   :  { %294 = vmatmul.mubr.msk.bf16.gmra.mxu1 %vm181_vm3, %v307_v30 }
  0xd3   :  { %v233_v32 = vpop.f32.mrf.mxu1 }
  0xd4   :  { %v234_v33 = vadd.f32 %v262_v31, %v233_v32  ;;  %v225_v34 = vpop.f32.mrf.mxu0 }
  0xd5   :  { %v226_v35 = vadd.f32 %v262_v31, %v225_v34  ;;  %v291_v36 = vpop.f32.mrf.mxu1 }
  0xd6   :  { %250 = vst [vmem:[%s386_s4 + $0x10] sm:$0xff] %v234_v33  ;;  %v287_v37 = vpop.f32.mrf.mxu0 }
  0xd7   :  { %248 = vst [vmem:[%s386_s4] sm:$0xff] %v226_v35  ;;  %v236_v38 = vpop.f32.mrf.mxu1 }
  0xd8   :  { %v237_v39 = vadd.f32 %v262_v31, %v236_v38  ;;  %v228_v40 = vpop.f32.mrf.mxu0 }
  0xd9   :  { %v229_v41 = vadd.f32 %v262_v31, %v228_v40  ;;  %v292_v42 = vpop.f32.mrf.mxu1 }
  0xda   :  { %251 = vst [vmem:[%s386_s4 + $0x18] sm:$0xff] %v237_v39  ;;  %v288_v43 = vpop.f32.mrf.mxu0 }
  0xdb   :  { %249 = vst [vmem:[%s386_s4 + $0x8] sm:$0xff] %v229_v41  ;;  %v241_v44 = vpop.f32.mrf.mxu1 }
  0xdc   :  { %v242_v45 = vadd.f32 %v262_v31, %v241_v44 }
  0xdd   :  { %v295_v46 = vpop.f32.mrf.mxu1 }
  0xde   :  { %252 = vst [vmem:[%s386_s4 + $0x20] sm:$0xff] %v242_v45 }
  0xdf   :  { %v244_v47 = vpop.f32.mrf.mxu1 }
  0xe0   :  { %v245_v48 = vadd.f32 %v262_v31, %v244_v47 }
  0xe1   :  { %v296_v49 = vpop.f32.mrf.mxu1 }
  0xe2   :  { %253 = vst [vmem:[%s386_s4 + $0x28] sm:$0xff] %v245_v48 }

// kernel: vit_forward.28
= control target key start
LH: loop header
LB: loop body
LE: loop exit
PB: predicated region body
PF: predicated region fallthrough
CT: control target
= control target key end

     0   :  { %s418_s0 = inlined_call_operand.vmem [shape: bf16[64,128], index: 0, kind: input, shape index: {}]   ;;  %s419_s1 = inlined_call_operand.vmem [shape: f32[1,128], index: 1, kind: input, shape index: {}]   ;;  %s420_s2 = inlined_call_operand.vmem [shape: bf16[34,64], index: 2, kind: input, shape index: {}]   ;;  %s421_s3 = inlined_call_operand.<no memory space> [shape: bf16[], index: 3, kind: input, shape index: {}]   ;;  %s422_s4 = inlined_call_operand.vmem [shape: f32[48,128], index: 4, kind: output, shape index: {}]  }
   0x1   :  { %v9_v0 = vstv %s421_s3 }
   0x2   :  { %v10_v1 = vunpack.i.l.bf16 %v9_v0 }
   0x3   :  { %v331_v2 = vld [vmem:[%s418_s0 + $0x18] sm:$0xff]   ;;  %v28_v3 = vlaneseq  ;;  %v338_v4 = vmov 0.0   ;;  %v332_v5 = vld [vmem:[%s418_s0 + $0x10] sm:$0xff]   ;;  %vm339_vm0 = vmmov 0   ;;  %v275_v7 = vld [vmem:[%s420_s2 + $0x8] sm:$0xff]   ;;  %vm197_vm3 = vcmask 523264  }
   0x4   :  { %321 = vmatprep.subr.bf16.mxu1 %v338_v4  ;;  %301 = vmatprep.subr.bf16.mxu0 %v338_v4  ;;  %v20_v8 = vld [vmem:[%s420_s2] sm:$0xff]   ;;  %v277_v9 = vld [vmem:[%s420_s2 + $0x10] sm:$0xf]  ;;  %v58_v11 = vunpack.c.l.bf16 %v275_v7  ;;  %v86_v12 = vunpack.c.h.bf16 %v275_v7  ;;  %v333_v15 = vld [vmem:[%s418_s0 + $0x8] sm:$0xff]  }
   0x5   :  { %325 = vmatpush3.bf16.msra.mxu1 %v331_v2  ;;  %302 = vmatpush3.bf16.msra.mxu0 %v331_v2  ;;  %v29_v6 = vand.u32 127, %v28_v3  ;;  %v117_v10 = vshrl.u32 %v28_v3, 7  ;;  %v21_v13 = vunpack.c.l.bf16 %v20_v8  ;;  %v39_v14 = vunpack.c.h.bf16 %v20_v8  ;;  %v334_v26 = vld [vmem:[%s418_s0] sm:$0xff]  }
   0x6   :  { %322 = vmatprep.subr.bf16.mxu1 %v338_v4  ;;  %303 = vmatprep.subr.bf16.mxu0 %v338_v4  ;;  %v114_v16 = vunpack.c.l.bf16 %v277_v9  ;;  %v278_v33 = vld [vmem:[%s419_s1] ss:$0 sm:$0xff] }
   0x7   :  { %313 = vmatprep.mubr.msk.bf16.mxu1 %vm339_vm0, %v338_v4  ;;  %vm31_vm1 = vcmp.lt.s32.totalorder %v29_v6, 64  ;;  %309 = vmatprep.mubr.msk.bf16.mxu0 %vm339_vm0, %v338_v4  ;;  %v118_v17 = vadd.s32 32, %v117_v10 }
   0x8   :  { %v69_v18 = vsel %vm31_vm1, %v58_v11, %v10_v1  ;;  %v97_v19 = vsel %vm31_vm1, %v86_v12, %v10_v1  ;;  %v32_v20 = vsel %vm31_vm1, %v21_v13, %v10_v1  ;;  %v50_v24 = vsel %vm31_vm1, %v39_v14, %v10_v1 }
   0x9   :  { %326 = vmatpush3.bf16.msra.mxu1 %v332_v5  ;;  %304 = vmatpush3.bf16.msra.mxu0 %v332_v5  ;;  %v71_v21 = vpack.c.bf16 %v338_v4, %v69_v18  ;;  %v99_v22 = vpack.c.bf16 %v338_v4, %v97_v19  ;;  %v33_v23 = vpack.c.bf16 %v338_v4, %v32_v20  ;;  %vm119_vm2 = vcmp.lt.s32.totalorder %v118_v17, 34 }
   0xa   :  { %323 = vmatprep.subr.bf16.mxu1 %v338_v4  ;;  %305 = vmatprep.subr.bf16.mxu0 %v338_v4  ;;  %v52_v25 = vpack.c.bf16 %v338_v4, %v50_v24  ;;  %v120_v27 = vsel %vm119_vm2, %v114_v16, %v10_v1 }
   0xb   :  { %74 = vst [vmem:[#allocation7 + $0x8] sm:$0xf] %v71_v21  ;;  %102 = vst [vmem:[#allocation7 + $0xc] sm:$0xf] %v99_v22  ;;  %v125_v28 = vsel %vm31_vm1, %v120_v27, %v10_v1 }
   0xc   :  { %36 = vst [vmem:[#allocation7] sm:$0xf] %v33_v23  ;;  %55 = vst [vmem:[#allocation7 + $0x4] sm:$0xf] %v52_v25  ;;  %v292_v29 = vpack.c.bf16 %v10_v1, %v125_v28 }
   0xd   :  { %327 = vmatpush3.bf16.msra.mxu1 %v333_v15  ;;  %306 = vmatpush3.bf16.msra.mxu0 %v333_v15 }
   0xe   :  { %324 = vmatprep.subr.bf16.mxu1 %v338_v4  ;;  %307 = vmatprep.subr.bf16.mxu0 %v338_v4  ;;  %293 = vst [vmem:[#allocation7 + $0x10] sm:$0xff] %v292_v29  }
  0x11   :  { %328 = vmatpush3.bf16.msra.mxu1 %v334_v26  ;;  %308 = vmatpush3.bf16.msra.mxu0 %v334_v26 }
  0x12   :  { %v335_v30 = vld [vmem:[#allocation7 + $0x8] sm:$0xff]  }
  0x13   :  { %v336_v31 = vld [vmem:[#allocation7] sm:$0xff]  }
  0x14   :  { %314 = vmatmul.mubr.msk.bf16.vlgmr.msra.gmra.mxu1 %vm197_vm3, %v335_v30  ;;  %310 = vmatmul.mubr.msk.bf16.vlgmr.msra.gmra.mxu0 %vm197_vm3, %v336_v31 }
  0x15   :  { %317 = vmatprep.mubr.msk.bf16.mxu1 %vm339_vm0, %v338_v4  ;;  %v337_v32 = vld [vmem:[#allocation7 + $0x10] sm:$0xff]  }
  0x1c   :  { %318 = vmatmul.mubr.msk.bf16.gmra.mxu1 %vm197_vm3, %v337_v32 }
  0xd4   :  { %v249_v34 = vpop.f32.mrf.mxu1  ;;  %v241_v36 = vpop.f32.mrf.mxu0 }
  0xd5   :  { %v250_v35 = vadd.f32 %v278_v33, %v249_v34  ;;  %v242_v37 = vadd.f32 %v278_v33, %v241_v36 }
  0xd6   :  { %v315_v38 = vpop.f32.mrf.mxu1  ;;  %v311_v39 = vpop.f32.mrf.mxu0 }
  0xd7   :  { %266 = vst [vmem:[%s422_s4 + $0x10] sm:$0xff] %v250_v35  ;;  %264 = vst [vmem:[%s422_s4] sm:$0xff] %v242_v37 }
  0xd8   :  { %v252_v40 = vpop.f32.mrf.mxu1  ;;  %v244_v42 = vpop.f32.mrf.mxu0 }
  0xd9   :  { %v253_v41 = vadd.f32 %v278_v33, %v252_v40  ;;  %v245_v43 = vadd.f32 %v278_v33, %v244_v42 }
  0xda   :  { %v316_v44 = vpop.f32.mrf.mxu1  ;;  %v312_v45 = vpop.f32.mrf.mxu0 }
  0xdb   :  { %267 = vst [vmem:[%s422_s4 + $0x18] sm:$0xff] %v253_v41  ;;  %265 = vst [vmem:[%s422_s4 + $0x8] sm:$0xff] %v245_v43 }
  0xdc   :  { %v257_v46 = vpop.f32.mrf.mxu1 }
  0xdd   :  { %v258_v47 = vadd.f32 %v278_v33, %v257_v46 }
  0xde   :  { %v319_v48 = vpop.f32.mrf.mxu1 }
  0xdf   :  { %268 = vst [vmem:[%s422_s4 + $0x20] sm:$0xff] %v258_v47 }
  0xe0   :  { %v260_v49 = vpop.f32.mrf.mxu1 }
  0xe1   :  { %v261_v50 = vadd.f32 %v278_v33, %v260_v49 }
  0xe2   :  { %v320_v51 = vpop.f32.mrf.mxu1 }
  0xe3   :  { %269 = vst [vmem:[%s422_s4 + $0x28] sm:$0xff] %v261_v50 }

// kernel: vit_forward.30
= control target key start
LH: loop header
LB: loop body
LE: loop exit
PB: predicated region body
PF: predicated region fallthrough
CT: control target
= control target key end

     0   :  { %s457_s0 = inlined_call_operand.vmem [shape: bf16[128,128], index: 0, kind: input, shape index: {}]   ;;  %s458_s1 = inlined_call_operand.vmem [shape: f32[1,128], index: 1, kind: input, shape index: {}]   ;;  %s459_s2 = inlined_call_operand.vmem [shape: bf16[34,128], index: 2, kind: input, shape index: {}]   ;;  %s460_s3 = inlined_call_operand.<no memory space> [shape: bf16[], index: 3, kind: input, shape index: {}]   ;;  %s461_s4 = inlined_call_operand.vmem [shape: f32[48,128], index: 4, kind: output, shape index: {}]  }
   0x1   :  { %v9_v0 = vstv %s460_s3 }
   0x2   :  { %v10_v1 = vunpack.i.l.bf16 %v9_v0 }
   0x3   :  { %v358_v2 = vld [vmem:[%s457_s0 + $0x38] sm:$0xff]   ;;  %v96_v3 = vlaneseq  ;;  %v370_v4 = vmov 0.0   ;;  %v359_v5 = vld [vmem:[%s457_s0 + $0x30] sm:$0xff]   ;;  %vm371_vm0 = vmmov 0   ;;  %v360_v8 = vld [vmem:[%s457_s0 + $0x28] sm:$0xff]  }
   0x4   :  { %340 = vmatprep.subr.bf16.mxu1 %v370_v4  ;;  %312 = vmatprep.subr.bf16.mxu0 %v370_v4  ;;  %v366_v9 = vld [vmem:[%s459_s2 + $0x8] sm:$0xff]   ;;  %v20_v10 = vld [vmem:[%s459_s2] sm:$0xff]   ;;  %v277_v11 = vld [vmem:[%s459_s2 + $0x10] sm:$0xf] }
   0x5   :  { %348 = vmatpush3.bf16.msra.mxu1 %v358_v2  ;;  %313 = vmatpush3.bf16.msra.mxu0 %v358_v2  ;;  %v97_v6 = vshrl.u32 %v96_v3, 7  ;;  %v361_v12 = vld [vmem:[%s457_s0 + $0x20] sm:$0xff]   ;;  %294 = vst [vmem:[#allocation7 + $0x8] sm:$0xff] %v366_v9   ;;  %31 = vst [vmem:[#allocation7] sm:$0xff] %v20_v10   ;;  %v94_v13 = vunpack.c.l.bf16 %v277_v11  ;;  %v362_v16 = vld [vmem:[%s457_s0 + $0x18] sm:$0xff]  }
   0x6   :  { %341 = vmatprep.subr.bf16.mxu1 %v370_v4  ;;  %314 = vmatprep.subr.bf16.mxu0 %v370_v4  ;;  %v363_v17 = vld [vmem:[%s457_s0 + $0x10] sm:$0xff]   ;;  %v364_v18 = vld [vmem:[%s457_s0 + $0x8] sm:$0xff]   ;;  %v365_v19 = vld [vmem:[%s457_s0] sm:$0xff]  }
   0x7   :  { %332 = vmatprep.mubr.msk.bf16.mxu1 %vm371_vm0, %v370_v4  ;;  %328 = vmatprep.mubr.msk.bf16.mxu0 %vm371_vm0, %v370_v4  ;;  %v98_v7 = vadd.s32 32, %v97_v6  ;;  %v278_v23 = vld [vmem:[%s458_s1] ss:$0 sm:$0xff] }
   0x9   :  { %349 = vmatpush3.bf16.msra.mxu1 %v359_v5  ;;  %315 = vmatpush3.bf16.msra.mxu0 %v359_v5  ;;  %vm99_vm1 = vcmp.lt.s32.totalorder %v98_v7, 34 }
   0xa   :  { %342 = vmatprep.subr.bf16.mxu1 %v370_v4  ;;  %316 = vmatprep.subr.bf16.mxu0 %v370_v4  ;;  %v100_v14 = vsel %vm99_vm1, %v94_v13, %v10_v1 }
   0xb   :  { %v298_v15 = vpack.c.bf16 %v10_v1, %v100_v14 }
   0xc   :  { %v367_v20 = vld [vmem:[#allocation7 + $0x8] sm:$0xff]   ;;  %v368_v21 = vld [vmem:[#allocation7] sm:$0xff]  }
   0xd   :  { %350 = vmatpush3.bf16.msra.mxu1 %v360_v8  ;;  %317 = vmatpush3.bf16.msra.mxu0 %v360_v8  ;;  %299 = vst [vmem:[#allocation7 + $0x10] sm:$0xff] %v298_v15  }
   0xe   :  { %343 = vmatprep.subr.bf16.mxu1 %v370_v4  ;;  %318 = vmatprep.subr.bf16.mxu0 %v370_v4 }
  0x11   :  { %351 = vmatpush3.bf16.msra.mxu1 %v361_v12  ;;  %319 = vmatpush3.bf16.msra.mxu0 %v361_v12 }
  0x12   :  { %344 = vmatprep.subr.bf16.mxu1 %v370_v4  ;;  %320 = vmatprep.subr.bf16.mxu0 %v370_v4 }
  0x14   :  { %v369_v22 = vld [vmem:[#allocation7 + $0x10] sm:$0xff]  }
  0x15   :  { %352 = vmatpush3.bf16.msra.mxu1 %v362_v16  ;;  %321 = vmatpush3.bf16.msra.mxu0 %v362_v16 }
  0x16   :  { %345 = vmatprep.subr.bf16.mxu1 %v370_v4  ;;  %322 = vmatprep.subr.bf16.mxu0 %v370_v4 }
  0x19   :  { %353 = vmatpush3.bf16.msra.mxu1 %v363_v17  ;;  %323 = vmatpush3.bf16.msra.mxu0 %v363_v17 }
  0x1a   :  { %346 = vmatprep.subr.bf16.mxu1 %v370_v4  ;;  %324 = vmatprep.subr.bf16.mxu0 %v370_v4 }
  0x1d   :  { %354 = vmatpush3.bf16.msra.mxu1 %v364_v18  ;;  %325 = vmatpush3.bf16.msra.mxu0 %v364_v18 }
  0x1e   :  { %347 = vmatprep.subr.bf16.mxu1 %v370_v4  ;;  %326 = vmatprep.subr.bf16.mxu0 %v370_v4 }
  0x21   :  { %355 = vmatpush3.bf16.msra.mxu1 %v365_v19  ;;  %327 = vmatpush3.bf16.msra.mxu0 %v365_v19 }
  0x24   :  { %333 = vmatmul.mubr.bf16.vlgmr.msra.gmra.mxu1 %v367_v20  ;;  %329 = vmatmul.mubr.bf16.vlgmr.msra.gmra.mxu0 %v368_v21 }
  0x25   :  { %336 = vmatprep.mubr.msk.bf16.mxu1 %vm371_vm0, %v370_v4 }
  0x2c   :  { %337 = vmatmul.mubr.bf16.gmra.mxu1 %v369_v22 }
  0xe4   :  { %v249_v24 = vpop.f32.mrf.mxu1  ;;  %v241_v25 = vpop.f32.mrf.mxu0 }
  0xe5   :  { %v250_v26 = vadd.f32 %v278_v23, %v249_v24  ;;  %v242_v27 = vadd.f32 %v278_v23, %v241_v25 }
  0xe6   :  { %v334_v28 = vpop.f32.mrf.mxu1  ;;  %v330_v29 = vpop.f32.mrf.mxu0 }
  0xe7   :  { %266 = vst [vmem:[%s461_s4 + $0x10] sm:$0xff] %v250_v26  ;;  %264 = vst [vmem:[%s461_s4] sm:$0xff] %v242_v27 }
  0xe8   :  { %v252_v30 = vpop.f32.mrf.mxu1  ;;  %v244_v31 = vpop.f32.mrf.mxu0 }
  0xe9   :  { %v253_v32 = vadd.f32 %v278_v23, %v252_v30  ;;  %v245_v33 = vadd.f32 %v278_v23, %v244_v31 }
  0xea   :  { %v335_v34 = vpop.f32.mrf.mxu1  ;;  %v331_v35 = vpop.f32.mrf.mxu0 }
  0xeb   :  { %267 = vst [vmem:[%s461_s4 + $0x18] sm:$0xff] %v253_v32  ;;  %265 = vst [vmem:[%s461_s4 + $0x8] sm:$0xff] %v245_v33 }
  0xec   :  { %v257_v36 = vpop.f32.mrf.mxu1 }
  0xed   :  { %v258_v37 = vadd.f32 %v278_v23, %v257_v36 }
  0xee   :  { %v338_v38 = vpop.f32.mrf.mxu1 }
  0xef   :  { %268 = vst [vmem:[%s461_s4 + $0x20] sm:$0xff] %v258_v37 }
  0xf0   :  { %v260_v39 = vpop.f32.mrf.mxu1 }
  0xf1   :  { %v261_v40 = vadd.f32 %v278_v23, %v260_v39 }
  0xf2   :  { %v339_v41 = vpop.f32.mrf.mxu1 }
  0xf3   :  { %269 = vst [vmem:[%s461_s4 + $0x28] sm:$0xff] %v261_v40 }

// kernel: vit_forward.34
= control target key start
LH: loop header
LB: loop body
LE: loop exit
PB: predicated region body
PF: predicated region fallthrough
CT: control target
= control target key end

     0   :  { %s201_s0 = inlined_call_operand.vmem [shape: bf16[32,128], index: 0, kind: input, shape index: {}]   ;;  %s202_s1 = inlined_call_operand.vmem [shape: f32[1,128], index: 1, kind: input, shape index: {}]   ;;  %s203_s2 = inlined_call_operand.vmem [shape: bf16[2,32], index: 2, kind: input, shape index: {}]   ;;  %s204_s3 = inlined_call_operand.<no memory space> [shape: bf16[], index: 3, kind: input, shape index: {}]   ;;  %s205_s4 = inlined_call_operand.vmem [shape: f32[16,128], index: 4, kind: output, shape index: {}]  }
   0x1   :  { %v9_v0 = vstv %s204_s3 }
   0x2   :  { %v10_v1 = vunpack.i.l.bf16 %v9_v0 }
   0x3   :  { %v150_v2 = vld [vmem:[%s201_s0 + $0x8] sm:$0xff]   ;;  %v26_v3 = vlaneseq  ;;  %v153_v4 = vmov 0.0   ;;  %v151_v5 = vld [vmem:[%s201_s0] sm:$0xff]   ;;  %vm154_vm0 = vmmov 0   ;;  %vm76_vm3 = vcmask 261120  }
   0x4   :  { %140 = vmatprep.subr.bf16.mxu0 %v153_v4  ;;  %144 = vmatprep.mubr.msk.bf16.mxu0 %vm154_vm0, %v153_v4  ;;  %v23_v6 = vld [vmem:[%s203_s2] sm:$0x1] }
   0x5   :  { %141 = vmatpush3.bf16.msra.mxu0 %v150_v2  ;;  %v27_v7 = vshrl.u32 %v26_v3, 7  ;;  %v32_v8 = vand.u32 127, %v26_v3  ;;  %v24_v9 = vunpack.c.l.bf16 %v23_v6  ;;  %v127_v14 = vld [vmem:[%s202_s1] ss:$0 sm:$0xff] }
   0x6   :  { %142 = vmatprep.subr.bf16.mxu0 %v153_v4 }
   0x7   :  { %vm29_vm1 = vcmp.lt.s32.totalorder %v27_v7, 2  ;;  %vm34_vm2 = vcmp.lt.s32.totalorder %v32_v8, 32 }
   0x8   :  { %v30_v10 = vsel %vm29_vm1, %v24_v9, %v10_v1 }
   0x9   :  { %143 = vmatpush3.bf16.msra.mxu0 %v151_v5  ;;  %v35_v11 = vsel %vm34_vm2, %v30_v10, %v10_v1 }
   0xa   :  { %v135_v12 = vpack.c.bf16 %v10_v1, %v35_v11 }
   0xc   :  { %136 = vst [vmem:[#allocation7] sm:$0xff] %v135_v12  }
  0x13   :  { %v152_v13 = vld [vmem:[#allocation7] sm:$0xff]  }
  0x14   :  { %145 = vmatmul.mubr.msk.bf16.vlgmr.msra.gmra.mxu0 %vm76_vm3, %v152_v13 }
  0xd4   :  { %v114_v15 = vpop.f32.mrf.mxu0 }
  0xd5   :  { %v115_v16 = vadd.f32 %v127_v14, %v114_v15 }
  0xd6   :  { %v146_v17 = vpop.f32.mrf.mxu0 }
  0xd7   :  { %121 = vst [vmem:[%s205_s4] sm:$0xff] %v115_v16 }
  0xd8   :  { %v117_v18 = vpop.f32.mrf.mxu0 }
  0xd9   :  { %v118_v19 = vadd.f32 %v127_v14, %v117_v18 }
  0xda   :  { %v147_v20 = vpop.f32.mrf.mxu0 }
  0xdb   :  { %122 = vst [vmem:[%s205_s4 + $0x8] sm:$0xff] %v118_v19 }

</bundles_post_ra>
